<compile_context>
chip_gen: v5e
topology: v5e:2x2
jax: 0.10.0
libtpu: 0.0.40
codegen_flags: <defaults>
</compile_context>

<pallas_src>
import math
import jax
import jax.numpy as jnp
from jax.experimental import pallas as pl
from jax.experimental.pallas import tpu as pltpu

IN_FEATURES = 784
H1, H2, OUT = 300, 100, 10
LANE = 128
SUBLANE = 8


def _round_up(v, m):
    return (v + m - 1) // m * m


# Lane-dense (128-aligned) padded dims.
IN_P = _round_up(IN_FEATURES, LANE)   # 896
H1_P = _round_up(H1, LANE)            # 384
H2_P = _round_up(H2, LANE)            # 128
OUT_P = _round_up(OUT, LANE)          # 128


# ----------------------------------------------------------------------------
# Pallas kernel: fused 3-layer MLP (all operands resident in VMEM)
# ----------------------------------------------------------------------------
def mlp_kernel(x_ref, w1_ref, b1_ref, w2_ref, b2_ref, w3_ref, b3_ref, o_ref):
    """o = relu(relu(x @ w1 + b1) @ w2 + b2) @ w3 + b3."""
    h = jnp.dot(x_ref[...], w1_ref[...], preferred_element_type=jnp.float32)
    h = jnp.maximum(h + b1_ref[...], 0.0)
    h = jnp.dot(h, w2_ref[...], preferred_element_type=jnp.float32)
    h = jnp.maximum(h + b2_ref[...], 0.0)
    o = jnp.dot(h, w3_ref[...], preferred_element_type=jnp.float32)
    o_ref[...] = (o + b3_ref[...]).astype(o_ref.dtype)


def fused_mlp(x_p, params_p, tm):
    """x_p: (Mp, IN_P) padded input; weights/biases already lane-padded."""
    Mp = x_p.shape[0]
    w1, b1, w2, b2, w3, b3 = params_p
    assert Mp % tm == 0
    grid = (Mp // tm,)
    return pl.pallas_call(
        mlp_kernel,
        out_shape=jax.ShapeDtypeStruct((Mp, OUT_P), x_p.dtype),
        grid_spec=pltpu.PrefetchScalarGridSpec(
            num_scalar_prefetch=0,
            grid=grid,
            in_specs=[
                pl.BlockSpec((tm, IN_P), lambda i: (i, 0)),
                pl.BlockSpec((IN_P, H1_P), lambda i: (0, 0)),   # resident
                pl.BlockSpec((1, H1_P), lambda i: (0, 0)),
                pl.BlockSpec((H1_P, H2_P), lambda i: (0, 0)),
                pl.BlockSpec((1, H2_P), lambda i: (0, 0)),
                pl.BlockSpec((H2_P, OUT_P), lambda i: (0, 0)),
                pl.BlockSpec((1, OUT_P), lambda i: (0, 0)),
            ],
            out_specs=pl.BlockSpec((tm, OUT_P), lambda i: (i, 0)),
        ),
        compiler_params=pltpu.CompilerParams(
            dimension_semantics=("parallel",)),
    )(x_p, w1, b1, w2, b2, w3, b3)


# ----------------------------------------------------------------------------
# Parameters: xavier-uniform weights, bias = 0.01 (matches init_weights), then
# zero-padded to lane-dense shapes (padding is exact, contributes nothing).
# ----------------------------------------------------------------------------
def make_params(key):
    k1, k2, k3 = jax.random.split(key, 3)

    def linear(k, fin, fout, fin_p, fout_p):
        limit = math.sqrt(6.0 / (fin + fout))
        w = jax.random.uniform(k, (fin, fout), jnp.float32, -limit, limit)
        b = jnp.full((1, fout), 0.01, jnp.float32)
        w = jnp.pad(w, ((0, fin_p - fin), (0, fout_p - fout)))
        b = jnp.pad(b, ((0, 0), (0, fout_p - fout)))
        return w, b

    w1, b1 = linear(k1, IN_FEATURES, H1, IN_P, H1_P)
    w2, b2 = linear(k2, H1, H2, H1_P, H2_P)
    w3, b3 = linear(k3, H2, OUT, H2_P, OUT_P)
    return (w1, b1, w2, b2, w3, b3)


# ----------------------------------------------------------------------------
# Forward (eval mode)
# ----------------------------------------------------------------------------
@jax.jit
def prunenn_forward(x, params_p):
    xf = x.reshape(-1, IN_FEATURES)                 # x.view(-1, 784)
    M = xf.shape[0]
    tm = SUBLANE                                    # sublane-aligned batch tile
    Mp = _round_up(M, tm)
    x_p = jnp.pad(xf, ((0, Mp - M), (0, IN_P - IN_FEATURES)))
    out_p = fused_mlp(x_p, params_p, tm)            # (Mp, OUT_P)
    return out_p[:M, :OUT]                          # strip batch + lane padding


if __name__ == "__main__":
    key = jax.random.PRNGKey(0)
    pkey, xkey = jax.random.split(key)
    params = make_params(pkey)
    # batch=2 single-channel 28x28 images (784 features per sample, as the
    # forward's view(-1, 784) implies).
    x = jax.random.normal(xkey, (2, 1, 28, 28), dtype=jnp.float32)
    out = prunenn_forward(x, params)
    out = jax.block_until_ready(out)
    assert out.shape == (2, OUT), out.shape
    assert bool(jnp.all(jnp.isfinite(out)))
    print("KERNEL_OK")
</pallas_src>

<mosaic_0001>
module attributes {stable_mosaic.version = 11 : i64} {
  func.func @mlp_kernel(%arg0: i32, %arg1: memref<8x896xf32, #tpu.memory_space<vmem>>, %arg2: memref<896x384xf32, #tpu.memory_space<vmem>>, %arg3: memref<1x384xf32, #tpu.memory_space<vmem>>, %arg4: memref<384x128xf32, #tpu.memory_space<vmem>>, %arg5: memref<1x128xf32, #tpu.memory_space<vmem>>, %arg6: memref<128x128xf32, #tpu.memory_space<vmem>>, %arg7: memref<1x128xf32, #tpu.memory_space<vmem>>, %arg8: memref<8x128xf32, #tpu.memory_space<vmem>>) attributes {dimension_semantics = [#tpu.dimension_semantics<parallel>], iteration_bounds = array<i64: 1>, scalar_prefetch = 0 : i64, scratch_operands = 0 : i64, tpu.core_type = #tpu.core_type<tc>, window_params = [{transform_indices = @transform_0, window_bounds = array<i64: 8, 896>}, {pipeline_mode = #tpu.pipeline_mode<synchronous>, transform_indices = @transform_1, window_bounds = array<i64: 896, 384>}, {pipeline_mode = #tpu.pipeline_mode<synchronous>, transform_indices = @transform_2, window_bounds = array<i64: 1, 384>}, {pipeline_mode = #tpu.pipeline_mode<synchronous>, transform_indices = @transform_3, window_bounds = array<i64: 384, 128>}, {pipeline_mode = #tpu.pipeline_mode<synchronous>, transform_indices = @transform_4, window_bounds = array<i64: 1, 128>}, {pipeline_mode = #tpu.pipeline_mode<synchronous>, transform_indices = @transform_5, window_bounds = array<i64: 128, 128>}, {pipeline_mode = #tpu.pipeline_mode<synchronous>, transform_indices = @transform_6, window_bounds = array<i64: 1, 128>}, {transform_indices = @transform_7, window_bounds = array<i64: 8, 128>}]} {
    %c0 = arith.constant 0 : index
    %c0_0 = arith.constant 0 : index
    %0 = vector.load %arg1[%c0, %c0_0] : memref<8x896xf32, #tpu.memory_space<vmem>>, vector<8x896xf32>
    %c0_1 = arith.constant 0 : index
    %c0_2 = arith.constant 0 : index
    %1 = vector.load %arg2[%c0_1, %c0_2] : memref<896x384xf32, #tpu.memory_space<vmem>>, vector<896x384xf32>
    %cst = arith.constant dense<0.000000e+00> : vector<8x384xf32>
    %2 = tpu.matmul %0, %1, %cst {dimension_numbers = #tpu.dot_dimension_numbers<[1], [0], [0], [1], [0, 0, 1, 1], [], []>} : vector<8x896xf32>, vector<896x384xf32>, vector<8x384xf32> -> vector<8x384xf32>
    %c0_3 = arith.constant 0 : index
    %c0_4 = arith.constant 0 : index
    %3 = vector.load %arg3[%c0_3, %c0_4] : memref<1x384xf32, #tpu.memory_space<vmem>>, vector<1x384xf32>
    %4 = vector.broadcast %3 : vector<1x384xf32> to vector<8x384xf32>
    %5 = arith.addf %2, %4 : vector<8x384xf32>
    %cst_5 = arith.constant 0.000000e+00 : f32
    %6 = vector.broadcast %cst_5 : f32 to vector<8x384xf32>
    %7 = arith.maximumf %5, %6 : vector<8x384xf32>
    %c0_6 = arith.constant 0 : index
    %c0_7 = arith.constant 0 : index
    %8 = vector.load %arg4[%c0_6, %c0_7] : memref<384x128xf32, #tpu.memory_space<vmem>>, vector<384x128xf32>
    %cst_8 = arith.constant dense<0.000000e+00> : vector<8x128xf32>
    %9 = tpu.matmul %7, %8, %cst_8 {dimension_numbers = #tpu.dot_dimension_numbers<[1], [0], [0], [1], [0, 0, 1, 1], [], []>} : vector<8x384xf32>, vector<384x128xf32>, vector<8x128xf32> -> vector<8x128xf32>
    %c0_9 = arith.constant 0 : index
    %c0_10 = arith.constant 0 : index
    %10 = vector.load %arg5[%c0_9, %c0_10] : memref<1x128xf32, #tpu.memory_space<vmem>>, vector<1x128xf32>
    %11 = vector.broadcast %10 : vector<1x128xf32> to vector<8x128xf32>
    %12 = arith.addf %9, %11 : vector<8x128xf32>
    %cst_11 = arith.constant 0.000000e+00 : f32
    %13 = vector.broadcast %cst_11 : f32 to vector<8x128xf32>
    %14 = arith.maximumf %12, %13 : vector<8x128xf32>
    %c0_12 = arith.constant 0 : index
    %c0_13 = arith.constant 0 : index
    %15 = vector.load %arg6[%c0_12, %c0_13] : memref<128x128xf32, #tpu.memory_space<vmem>>, vector<128x128xf32>
    %cst_14 = arith.constant dense<0.000000e+00> : vector<8x128xf32>
    %16 = tpu.matmul %14, %15, %cst_14 {dimension_numbers = #tpu.dot_dimension_numbers<[1], [0], [0], [1], [0, 0, 1, 1], [], []>} : vector<8x128xf32>, vector<128x128xf32>, vector<8x128xf32> -> vector<8x128xf32>
    %c0_15 = arith.constant 0 : index
    %c0_16 = arith.constant 0 : index
    %17 = vector.load %arg7[%c0_15, %c0_16] : memref<1x128xf32, #tpu.memory_space<vmem>>, vector<1x128xf32>
    %18 = vector.broadcast %17 : vector<1x128xf32> to vector<8x128xf32>
    %19 = arith.addf %16, %18 : vector<8x128xf32>
    %c0_17 = arith.constant 0 : index
    %c0_18 = arith.constant 0 : index
    %20 = vector.load %arg8[%c0_17, %c0_18] : memref<8x128xf32, #tpu.memory_space<vmem>>, vector<8x128xf32>
    tpu.vector_store %arg8[%c0_17, %c0_18], %19 {strides = array<i32>} : memref<8x128xf32, #tpu.memory_space<vmem>>, vector<8x128xf32>,
    return
  }
  func.func @transform_0(%arg0: i32) -> (i32, i32) {
    %c0_i32 = arith.constant 0 : i32
    %c0_i32_0 = arith.constant 0 : i32
    return %arg0, %c0_i32 : i32, i32
  }
  func.func @transform_1(%arg0: i32) -> (i32, i32) {
    %c0_i32 = arith.constant 0 : i32
    %c0_i32_0 = arith.constant 0 : i32
    %c0_i32_1 = arith.constant 0 : i32
    return %c0_i32, %c0_i32_0 : i32, i32
  }
  func.func @transform_2(%arg0: i32) -> (i32, i32) {
    %c0_i32 = arith.constant 0 : i32
    %c0_i32_0 = arith.constant 0 : i32
    %c0_i32_1 = arith.constant 0 : i32
    return %c0_i32, %c0_i32_0 : i32, i32
  }
  func.func @transform_3(%arg0: i32) -> (i32, i32) {
    %c0_i32 = arith.constant 0 : i32
    %c0_i32_0 = arith.constant 0 : i32
    %c0_i32_1 = arith.constant 0 : i32
    return %c0_i32, %c0_i32_0 : i32, i32
  }
  func.func @transform_4(%arg0: i32) -> (i32, i32) {
    %c0_i32 = arith.constant 0 : i32
    %c0_i32_0 = arith.constant 0 : i32
    %c0_i32_1 = arith.constant 0 : i32
    return %c0_i32, %c0_i32_0 : i32, i32
  }
  func.func @transform_5(%arg0: i32) -> (i32, i32) {
    %c0_i32 = arith.constant 0 : i32
    %c0_i32_0 = arith.constant 0 : i32
    %c0_i32_1 = arith.constant 0 : i32
    return %c0_i32, %c0_i32_0 : i32, i32
  }
  func.func @transform_6(%arg0: i32) -> (i32, i32) {
    %c0_i32 = arith.constant 0 : i32
    %c0_i32_0 = arith.constant 0 : i32
    %c0_i32_1 = arith.constant 0 : i32
    return %c0_i32, %c0_i32_0 : i32, i32
  }
  func.func @transform_7(%arg0: i32) -> (i32, i32) {
    %c0_i32 = arith.constant 0 : i32
    %c0_i32_0 = arith.constant 0 : i32
    return %arg0, %c0_i32 : i32, i32
  }
}

</mosaic_0001>

<bundles_post_ra>
// kernel: prunenn_forward.1
= control target key start
LH: loop header
LB: loop body
LE: loop exit
PB: predicated region body
PF: predicated region fallthrough
CT: control target
= control target key end

     0   :  { %12 = vsyncpa [#allocation3], 0  ;;  %s1346_s0 = inlined_call_operand.vmem [shape: f32[8,896], index: 0, kind: input, shape index: {}]   ;;  %s1347_s1 = inlined_call_operand.hbm [shape: f32[896,384], index: 1, kind: input, shape index: {}]   ;;  %s1348_s2 = inlined_call_operand.hbm [shape: f32[1,384], index: 2, kind: input, shape index: {}]   ;;  %s1349_s3 = inlined_call_operand.hbm [shape: f32[384,128], index: 3, kind: input, shape index: {}]   ;;  %s1350_s4 = inlined_call_operand.hbm [shape: f32[1,128], index: 4, kind: input, shape index: {}]   ;;  %s1351_s5 = inlined_call_operand.hbm [shape: f32[128,128], index: 5, kind: input, shape index: {}]   ;;  %s1352_s6 = inlined_call_operand.hbm [shape: f32[1,128], index: 6, kind: input, shape index: {}]   ;;  %s1353_s7 = inlined_call_operand.vmem [shape: f32[8,128], index: 7, kind: output, shape index: {}]  }
   0x1   :  { %13 = vsyncpa [#allocation5], 0 }
   0x2   :  { %14 = vsyncpa [#allocation8], 0  ;;  %s36_s26 = sshll.u32 %s1348_s2, 4  ;;  %s37_s26 = int_to_ptr.hbm [resolvable:$true] %s36_s26 }
   0x3   :  { %15 = vsyncpa [#allocation11], 0  ;;  %s1214_s27 = smov [#allocation4]   ;;  %s60_s8 = sshll.u32 %s1350_s4, 4  ;;  %s61_s8 = int_to_ptr.hbm [resolvable:$true] %s60_s8 }
   0x4   :  { %s38_s28 = sshll.u32 %s1214_s27, 4  ;;  %s1215_s9 = smov [#allocation7]   ;;  %s39_s28 = int_to_ptr.vmem [resolvable:$true] %s38_s28 }
   0x5   :  { %41 = dma.hbm_to_vmem [thread:$0]  %s37_s26, 48, %s39_s28, [#allocation5]  }
   0x6   :  { %s62_s10 = sshll.u32 %s1215_s9, 4  ;;  %s22_s13 = sshll.u32 %s1347_s1, 4  ;;  %s63_s10 = int_to_ptr.vmem [resolvable:$true] %s62_s10  ;;  %s23_s13 = int_to_ptr.hbm [resolvable:$true] %s22_s13 }
   0x7   :  { %65 = dma.hbm_to_vmem [thread:$0]  %s61_s8, 16, %s63_s10, [#allocation8]  }
   0x8   :  { %s1216_s2 = smov [#allocation2]   ;;  %s46_s17 = sshll.u32 %s1349_s3, 4  ;;  %s47_s17 = int_to_ptr.hbm [resolvable:$true] %s46_s17 }
   0x9   :  { %s24_s14 = sshll.u32 %s1216_s2, 4  ;;  %s1217_s18 = smov 384   ;;  %s25_s14 = int_to_ptr.vmem [resolvable:$true] %s24_s14 }
   0xa   :  { %s1218_s4 = smov 24   ;;  %s1219_s19 = smov [#allocation6]  }
   0xb   :  { %30 = dma.hbm_to_vmem [thread:$0]  %s23_s13, 43008, %s25_s14, [#allocation3], %s1217_s18, %s1217_s18, %s1218_s4  }
   0xc   :  { %s48_s20 = sshll.u32 %s1219_s19, 4  ;;  %s1220_s21 = smov 128   ;;  %s49_s20 = int_to_ptr.vmem [resolvable:$true] %s48_s20 }
   0xd   :  { %s1221_s22 = smov 8   ;;  %s70_s24 = sshll.u32 %s1351_s5, 4  ;;  %s71_s24 = int_to_ptr.hbm [resolvable:$true] %s70_s24 }
   0xe   :  { %54 = dma.hbm_to_vmem [thread:$0]  %s47_s17, 6144, %s49_s20, [#allocation5], %s1220_s21, %s1220_s21, %s1221_s22  }
   0xf   :  { %s1222_s25 = smov [#allocation9]   ;;  %s84_s28 = sshll.u32 %s1352_s6, 4  ;;  %s85_s28 = int_to_ptr.hbm [resolvable:$true] %s84_s28 }
  0x10   :  { %s72_s26 = sshll.u32 %s1222_s25, 4  ;;  %s1223_s29 = smov [#allocation10]   ;;  %s73_s26 = int_to_ptr.vmem [resolvable:$true] %s72_s26 }
  0x11   :  { %78 = dma.hbm_to_vmem [thread:$0]  %s71_s24, 2048, %s73_s26, [#allocation8], %s1220_s21, %s1220_s21, %s1221_s22  }
  0x12   :  { %s86_s30 = sshll.u32 %s1223_s29, 4  ;;  %s87_s30 = int_to_ptr.vmem [resolvable:$true] %s86_s30 }
  0x13   :  { %89 = dma.hbm_to_vmem [thread:$0]  %s85_s28, 16, %s87_s30, [#allocation11]  }
  0x14   :  { %1206 = dma.done.wait [#allocation3], 43008  }
  0x15   :  { %1207 = vsyncadd [#allocation3], 4294924288 }
  0x16   :  { %1208 = dma.done.wait [#allocation5], 6192  }
  0x17   :  { %1209 = vsyncadd [#allocation5], 4294961104 }
  0x18   :  { %1210 = dma.done.wait [#allocation8], 2064  }
  0x19   :  { %1211 = vsyncadd [#allocation8], 4294965232 }
  0x1a   :  { %1212 = dma.done.wait [#allocation11], 16  }
  0x1b   :  { %1213 = vsyncadd [#allocation11], 4294967280  ;;  %v166_v0 = vld [vmem:[#allocation2 + $0x168] sm:$0xff]  ;;  %v163_v1 = vld [vmem:[#allocation2 + $0x150] sm:$0xff] }
  0x1c   :  { %v214_v2 = vld [vmem:[#allocation2 + $0x2e8] sm:$0xff]  ;;  %465 = vmatpush.msra.mxu0 %v166_v0  ;;  %v211_v3 = vld [vmem:[#allocation2 + $0x2d0] sm:$0xff]  ;;  %v160_v4 = vld [vmem:[#allocation2 + $0x138] sm:$0xff] }
  0x1d   :  { %485 = vmatpush.msra.mxu1 %v214_v2  ;;  %v208_v5 = vld [vmem:[#allocation2 + $0x2b8] sm:$0xff]  ;;  %v262_v6 = vld [vmem:[#allocation2 + $0x468] sm:$0xff]  ;;  %v259_v7 = vld [vmem:[#allocation2 + $0x450] sm:$0xff] }
  0x1e   :  { %466 = vmatpush.msra.mxu0 %v163_v1  ;;  %v157_v8 = vld [vmem:[#allocation2 + $0x120] sm:$0xff]  ;;  %505 = vmatpush.msra.mxu2 %v262_v6  ;;  %v256_v10 = vld [vmem:[#allocation2 + $0x438] sm:$0xff]  ;;  %v154_v11 = vld [vmem:[#allocation2 + $0x108] sm:$0xff] }
  0x1f   :  { %486 = vmatpush.msra.mxu1 %v211_v3  ;;  %v205_v9 = vld [vmem:[#allocation2 + $0x2a0] sm:$0xff]  ;;  %v202_v12 = vld [vmem:[#allocation2 + $0x288] sm:$0xff]  ;;  %v151_v14 = vld [vmem:[#allocation2 + $0xf0] sm:$0xff] }
  0x20   :  { %467 = vmatpush.msra.mxu0 %v160_v4  ;;  %506 = vmatpush.msra.mxu2 %v259_v7  ;;  %v253_v13 = vld [vmem:[#allocation2 + $0x420] sm:$0xff]  ;;  %v199_v15 = vld [vmem:[#allocation2 + $0x270] sm:$0xff]  ;;  %v250_v16 = vld [vmem:[#allocation2 + $0x408] sm:$0xff] }
  0x21   :  { %487 = vmatpush.msra.mxu1 %v208_v5  ;;  %v148_v17 = vld [vmem:[#allocation2 + $0xd8] sm:$0xff]  ;;  %v310_v19 = vld [vmem:[#allocation2 + $0x5e8] sm:$0xff]  ;;  %v247_v20 = vld [vmem:[#allocation2 + $0x3f0] sm:$0xff] }
  0x22   :  { %468 = vmatpush.msra.mxu0 %v157_v8  ;;  %507 = vmatpush.msra.mxu2 %v256_v10  ;;  %v196_v18 = vld [vmem:[#allocation2 + $0x258] sm:$0xff]  ;;  %v145_v21 = vld [vmem:[#allocation2 + $0xc0] sm:$0xff]  ;;  %v307_v23 = vld [vmem:[#allocation2 + $0x5d0] sm:$0xff] }
  0x23   :  { %488 = vmatpush.msra.mxu1 %v205_v9  ;;  %v193_v22 = vld [vmem:[#allocation2 + $0x240] sm:$0xff]  ;;  %525 = vmatpush.msra.mxu3 %v310_v19  ;;  %v244_v24 = vld [vmem:[#allocation2 + $0x3d8] sm:$0xff]  ;;  %v142_v26 = vld [vmem:[#allocation2 + $0xa8] sm:$0xff] }
  0x24   :  { %469 = vmatpush.msra.mxu0 %v154_v11  ;;  %508 = vmatpush.msra.mxu2 %v253_v13  ;;  %v304_v25 = vld [vmem:[#allocation2 + $0x5b8] sm:$0xff]  ;;  %v190_v27 = vld [vmem:[#allocation2 + $0x228] sm:$0xff]  ;;  %v241_v28 = vld [vmem:[#allocation2 + $0x3c0] sm:$0xff] }
  0x25   :  { %489 = vmatpush.msra.mxu1 %v202_v12  ;;  %526 = vmatpush.msra.mxu3 %v307_v23  ;;  %v301_v29 = vld [vmem:[#allocation2 + $0x5a0] sm:$0xff]  ;;  %v139_v30 = vld [vmem:[#allocation2 + $0x90] sm:$0xff]  ;;  %v238_v32 = vld [vmem:[#allocation2 + $0x3a8] sm:$0xff] }
  0x26   :  { %470 = vmatpush.msra.mxu0 %v151_v14  ;;  %509 = vmatpush.msra.mxu2 %v250_v16  ;;  %v187_v31 = vld [vmem:[#allocation2 + $0x210] sm:$0xff]  ;;  %v298_v33 = vld [vmem:[#allocation2 + $0x588] sm:$0xff]  ;;  %v136_v34 = vld [vmem:[#allocation2 + $0x78] sm:$0xff] }
  0x27   :  { %490 = vmatpush.msra.mxu1 %v199_v15  ;;  %527 = vmatpush.msra.mxu3 %v304_v25  ;;  %v184_v35 = vld [vmem:[#allocation2 + $0x1f8] sm:$0xff]  ;;  %v235_v36 = vld [vmem:[#allocation2 + $0x390] sm:$0xff]  ;;  %v133_v38 = vld [vmem:[#allocation2 + $0x60] sm:$0xff] }
  0x28   :  { %471 = vmatpush.msra.mxu0 %v148_v17  ;;  %510 = vmatpush.msra.mxu2 %v247_v20  ;;  %v295_v37 = vld [vmem:[#allocation2 + $0x570] sm:$0xff]  ;;  %v181_v39 = vld [vmem:[#allocation2 + $0x1e0] sm:$0xff]  ;;  %v232_v40 = vld [vmem:[#allocation2 + $0x378] sm:$0xff] }
  0x29   :  { %491 = vmatpush.msra.mxu1 %v196_v18  ;;  %528 = vmatpush.msra.mxu3 %v301_v29  ;;  %v292_v41 = vld [vmem:[#allocation2 + $0x558] sm:$0xff]  ;;  %v130_v42 = vld [vmem:[#allocation2 + $0x48] sm:$0xff]  ;;  %v229_v44 = vld [vmem:[#allocation2 + $0x360] sm:$0xff] }
  0x2a   :  { %472 = vmatpush.msra.mxu0 %v145_v21  ;;  %511 = vmatpush.msra.mxu2 %v244_v24  ;;  %v178_v43 = vld [vmem:[#allocation2 + $0x1c8] sm:$0xff]  ;;  %v289_v45 = vld [vmem:[#allocation2 + $0x540] sm:$0xff]  ;;  %v127_v46 = vld [vmem:[#allocation2 + $0x30] sm:$0xff] }
  0x2b   :  { %492 = vmatpush.msra.mxu1 %v193_v22  ;;  %529 = vmatpush.msra.mxu3 %v298_v33  ;;  %v175_v47 = vld [vmem:[#allocation2 + $0x1b0] sm:$0xff]  ;;  %v226_v48 = vld [vmem:[#allocation2 + $0x348] sm:$0xff]  ;;  %v124_v50 = vld [vmem:[#allocation2 + $0x18] sm:$0xff] }
  0x2c   :  { %473 = vmatpush.msra.mxu0 %v142_v26  ;;  %512 = vmatpush.msra.mxu2 %v241_v28  ;;  %v286_v49 = vld [vmem:[#allocation2 + $0x528] sm:$0xff]  ;;  %v172_v51 = vld [vmem:[#allocation2 + $0x198] sm:$0xff]  ;;  %v223_v52 = vld [vmem:[#allocation2 + $0x330] sm:$0xff] }
  0x2d   :  { %493 = vmatpush.msra.mxu1 %v190_v27  ;;  %530 = vmatpush.msra.mxu3 %v295_v37  ;;  %v283_v53 = vld [vmem:[#allocation2 + $0x510] sm:$0xff]  ;;  %v121_v54 = vld [vmem:[#allocation2] sm:$0xff]  ;;  %v358_v56 = vld [vmem:[#allocation2 + $0x768] sm:$0xff] }
  0x2e   :  { %474 = vmatpush.msra.mxu0 %v139_v30  ;;  %513 = vmatpush.msra.mxu2 %v238_v32  ;;  %v169_v55 = vld [vmem:[#allocation2 + $0x180] sm:$0xff]  ;;  %v406_v57 = vld [vmem:[#allocation2 + $0x8e8] sm:$0xff]  ;;  %v220_v58 = vld [vmem:[#allocation2 + $0x318] sm:$0xff] }
  0x2f   :  { %494 = vmatpush.msra.mxu1 %v187_v31  ;;  %531 = vmatpush.msra.mxu3 %v292_v41  ;;  %v280_v59 = vld [vmem:[#allocation2 + $0x4f8] sm:$0xff]  ;;  %v355_v60 = vld [vmem:[#allocation2 + $0x750] sm:$0xff]  ;;  %v217_v62 = vld [vmem:[#allocation2 + $0x300] sm:$0xff] }
  0x30   :  { %475 = vmatpush.msra.mxu0 %v136_v34  ;;  %514 = vmatpush.msra.mxu2 %v235_v36  ;;  %v403_v61 = vld [vmem:[#allocation2 + $0x8d0] sm:$0xff]  ;;  %v277_v63 = vld [vmem:[#allocation2 + $0x4e0] sm:$0xff]  ;;  %v352_v0 = vld [vmem:[#allocation2 + $0x738] sm:$0xff] }
  0x31   :  { %495 = vmatpush.msra.mxu1 %v184_v35  ;;  %532 = vmatpush.msra.mxu3 %v289_v45  ;;  %v400_v1 = vld [vmem:[#allocation2 + $0x8b8] sm:$0xff]  ;;  %v454_v2 = vld [vmem:[#allocation2 + $0xa68] sm:$0xff]  ;;  %v349_v4 = vld [vmem:[#allocation2 + $0x720] sm:$0xff] }
  0x32   :  { %476 = vmatpush.msra.mxu0 %v133_v38  ;;  %515 = vmatpush.msra.mxu2 %v232_v40  ;;  %v274_v3 = vld [vmem:[#allocation2 + $0x4c8] sm:$0xff]  ;;  %v397_v5 = vld [vmem:[#allocation2 + $0x8a0] sm:$0xff]  ;;  %v451_v6 = vld [vmem:[#allocation2 + $0xa50] sm:$0xff] }
  0x33   :  { %496 = vmatpush.msra.mxu1 %v181_v39  ;;  %533 = vmatpush.msra.mxu3 %v286_v49  ;;  %v271_v7 = vld [vmem:[#allocation2 + $0x4b0] sm:$0xff]  ;;  %v346_v8 = vld [vmem:[#allocation2 + $0x708] sm:$0xff]  ;;  %v448_v10 = vld [vmem:[#allocation2 + $0xa38] sm:$0xff] }
  0x34   :  { %477 = vmatpush.msra.mxu0 %v130_v42  ;;  %516 = vmatpush.msra.mxu2 %v229_v44  ;;  %v394_v9 = vld [vmem:[#allocation2 + $0x888] sm:$0xff]  ;;  %v268_v11 = vld [vmem:[#allocation2 + $0x498] sm:$0xff]  ;;  %v343_v12 = vld [vmem:[#allocation2 + $0x6f0] sm:$0xff] }
  0x35   :  { %497 = vmatpush.msra.mxu1 %v178_v43  ;;  %534 = vmatpush.msra.mxu3 %v283_v53  ;;  %v391_v13 = vld [vmem:[#allocation2 + $0x870] sm:$0xff]  ;;  %v445_v14 = vld [vmem:[#allocation2 + $0xa20] sm:$0xff]  ;;  %v340_v16 = vld [vmem:[#allocation2 + $0x6d8] sm:$0xff] }
  0x36   :  { %478 = vmatpush.msra.mxu0 %v127_v46  ;;  %517 = vmatpush.msra.mxu2 %v226_v48  ;;  %v265_v15 = vld [vmem:[#allocation2 + $0x480] sm:$0xff]  ;;  %v388_v17 = vld [vmem:[#allocation2 + $0x858] sm:$0xff]  ;;  %v442_v18 = vld [vmem:[#allocation2 + $0xa08] sm:$0xff] }
  0x37   :  { %498 = vmatpush.msra.mxu1 %v175_v47  ;;  %535 = vmatpush.msra.mxu3 %v280_v59  ;;  %v167_v19 = vld [vmem:[#allocation2 + $0x170] sm:$0xff]  ;;  %v337_v20 = vld [vmem:[#allocation2 + $0x6c0] sm:$0xff]  ;;  %v164_v23 = vld [vmem:[#allocation2 + $0x158] sm:$0xff] }
  0x38   :  { %479 = vmatpush.msra.mxu0 %v124_v50  ;;  %518 = vmatpush.msra.mxu2 %v223_v52  ;;  %v385_v21 = vld [vmem:[#allocation2 + $0x840] sm:$0xff]  ;;  %v439_v22 = vld [vmem:[#allocation2 + $0x9f0] sm:$0xff]  ;;  %v334_v24 = vld [vmem:[#allocation2 + $0x6a8] sm:$0xff] }
  0x39   :  { %499 = vmatpush.msra.mxu1 %v172_v51  ;;  %536 = vmatpush.msra.mxu3 %v277_v63  ;;  %v382_v25 = vld [vmem:[#allocation2 + $0x828] sm:$0xff]  ;;  %v436_v26 = vld [vmem:[#allocation2 + $0x9d8] sm:$0xff]  ;;  %v161_v27 = vld [vmem:[#allocation2 + $0x140] sm:$0xff] }
  0x3a   :  { %480 = vmatpush.msra.mxu0 %v121_v54  ;;  %519 = vmatpush.msra.mxu2 %v220_v58  ;;  %v331_v28 = vld [vmem:[#allocation2 + $0x690] sm:$0xff]  ;;  %v433_v30 = vld [vmem:[#allocation2 + $0x9c0] sm:$0xff]  ;;  %v158_v31 = vld [vmem:[#allocation2 + $0x128] sm:$0xff] }
  0x3b   :  { %500 = vmatpush.msra.mxu1 %v169_v55  ;;  %537 = vmatpush.msra.mxu3 %v274_v3  ;;  %v379_v29 = vld [vmem:[#allocation2 + $0x810] sm:$0xff]  ;;  %v328_v32 = vld [vmem:[#allocation2 + $0x678] sm:$0xff]  ;;  %v430_v34 = vld [vmem:[#allocation2 + $0x9a8] sm:$0xff] }
  0x3c   :  { %545 = vmatpush.msrb.mxu0 %v358_v56  ;;  %520 = vmatpush.msra.mxu2 %v217_v62  ;;  %v376_v33 = vld [vmem:[#allocation2 + $0x7f8] sm:$0xff]  ;;  %v1285_v35 = vld [vmem:[%s1346_s0] sm:$0xff]  ;;  %v427_v38 = vld [vmem:[#allocation2 + $0x990] sm:$0xff] }
  0x3d   :  { %565 = vmatpush.msrb.mxu1 %v406_v57  ;;  %538 = vmatpush.msra.mxu3 %v271_v7  ;;  %v325_v36 = vld [vmem:[#allocation2 + $0x660] sm:$0xff]  ;;  %v1290_v39 = vld [vmem:[%s1346_s0 + $0x18] sm:$0xff]  ;;  %v322_v40 = vld [vmem:[#allocation2 + $0x648] sm:$0xff] }
  0x3e   :  { %546 = vmatpush.msrb.mxu0 %v355_v60  ;;  %585 = vmatpush.msrb.mxu2 %v454_v2  ;;  %v373_v37 = vld [vmem:[#allocation2 + $0x7e0] sm:$0xff]  ;;  %v370_v41 = vld [vmem:[#allocation2 + $0x7c8] sm:$0xff]  ;;  %v424_v42 = vld [vmem:[#allocation2 + $0x978] sm:$0xff] }
  0x3f   :  { %566 = vmatpush.msrb.mxu1 %v403_v61  ;;  %539 = vmatpush.msra.mxu3 %v268_v11  ;;  %v155_v43 = vld [vmem:[#allocation2 + $0x110] sm:$0xff]  ;;  %v421_v46 = vld [vmem:[#allocation2 + $0x960] sm:$0xff]  ;;  %v1297_v47 = vld [vmem:[%s1346_s0 + $0x8] sm:$0xff] }
  0x40   :  { %547 = vmatpush.msrb.mxu0 %v352_v0  ;;  %586 = vmatpush.msrb.mxu2 %v451_v6  ;;  %v319_v44 = vld [vmem:[#allocation2 + $0x630] sm:$0xff]  ;;  %v316_v48 = vld [vmem:[#allocation2 + $0x618] sm:$0xff]  ;;  %v418_v51 = vld [vmem:[#allocation2 + $0x948] sm:$0xff] }
  0x41   :  { %567 = vmatpush.msrb.mxu1 %v400_v1  ;;  %540 = vmatpush.msra.mxu3 %v265_v15  ;;  %v367_v45 = vld [vmem:[#allocation2 + $0x7b0] sm:$0xff]  ;;  %v364_v50 = vld [vmem:[#allocation2 + $0x798] sm:$0xff]  ;;  %v313_v52 = vld [vmem:[#allocation2 + $0x600] sm:$0xff] }
  0x42   :  { %548 = vmatpush.msrb.mxu0 %v349_v4  ;;  %587 = vmatpush.msrb.mxu2 %v448_v10  ;;  %v1302_v49 = vld [vmem:[%s1346_s0 + $0x10] sm:$0xff]  ;;  %v152_v53 = vld [vmem:[#allocation2 + $0xf8] sm:$0xff]  ;;  %v361_v55 = vld [vmem:[#allocation2 + $0x780] sm:$0xff] }
  0x43   :  { %568 = vmatpush.msrb.mxu1 %v397_v5  ;;  %605 = vmatpush.msrb.mxu3 %v167_v19  ;;  %v215_v54 = vld [vmem:[#allocation2 + $0x2f0] sm:$0xff]  ;;  %v212_v58 = vld [vmem:[#allocation2 + $0x2d8] sm:$0xff]  ;;  %v149_v59 = vld [vmem:[#allocation2 + $0xe0] sm:$0xff] }
  0x44   :  { %549 = vmatpush.msrb.mxu0 %v346_v8  ;;  %588 = vmatpush.msrb.mxu2 %v445_v14  ;;  %v415_v56 = vld [vmem:[#allocation2 + $0x930] sm:$0xff]  ;;  %v412_v60 = vld [vmem:[#allocation2 + $0x918] sm:$0xff]  ;;  %v209_v62 = vld [vmem:[#allocation2 + $0x2c0] sm:$0xff] }
  0x45   :  { %569 = vmatpush.msrb.mxu1 %v394_v9  ;;  %606 = vmatpush.msrb.mxu3 %v164_v23  ;;  %v263_v57 = vld [vmem:[#allocation2 + $0x470] sm:$0xff]  ;;  %v260_v61 = vld [vmem:[#allocation2 + $0x458] sm:$0xff]  ;;  %v146_v63 = vld [vmem:[#allocation2 + $0xc8] sm:$0xff] }
  0x46   :  { %550 = vmatpush.msrb.mxu0 %v343_v12  ;;  %589 = vmatpush.msrb.mxu2 %v442_v18  ;;  %v409_v0 = vld [vmem:[#allocation2 + $0x900] sm:$0xff]  ;;  %v1309_v2 = vld [vmem:[%s1346_s0 + $0x30] sm:$0xff]  ;;  %v206_v3 = vld [vmem:[#allocation2 + $0x2a8] sm:$0xff] }
  0x47   :  { %570 = vmatpush.msrb.mxu1 %v391_v13  ;;  %607 = vmatpush.msrb.mxu3 %v161_v27  ;;  %v257_v1 = vld [vmem:[#allocation2 + $0x440] sm:$0xff]  ;;  %v143_v5 = vld [vmem:[#allocation2 + $0xb0] sm:$0xff]  ;;  %v254_v7 = vld [vmem:[#allocation2 + $0x428] sm:$0xff] }
  0x48   :  { %551 = vmatpush.msrb.mxu0 %v340_v16  ;;  %590 = vmatpush.msrb.mxu2 %v439_v22  ;;  %v1314_v4 = vld [vmem:[%s1346_s0 + $0x20] sm:$0xff]  ;;  %v203_v6 = vld [vmem:[#allocation2 + $0x290] sm:$0xff]  ;;  %v1320_v8 = vld [vmem:[%s1346_s0 + $0x28] sm:$0xff] }
  0x49   :  { %571 = vmatpush.msrb.mxu1 %v388_v17  ;;  %608 = vmatpush.msrb.mxu3 %v158_v31  ;;  %v140_v9 = vld [vmem:[#allocation2 + $0x98] sm:$0xff]  ;;  %v251_v11 = vld [vmem:[#allocation2 + $0x410] sm:$0xff]  ;;  %v137_v12 = vld [vmem:[#allocation2 + $0x80] sm:$0xff] }
  0x4a   :  { %552 = vmatpush.msrb.mxu0 %v337_v20  ;;  %591 = vmatpush.msrb.mxu2 %v436_v26  ;;  %v200_v10 = vld [vmem:[#allocation2 + $0x278] sm:$0xff]  ;;  %v311_v13 = vld [vmem:[#allocation2 + $0x5f0] sm:$0xff]  ;;  %v197_v14 = vld [vmem:[#allocation2 + $0x260] sm:$0xff] }
  0x4b   :  { %572 = vmatpush.msrb.mxu1 %v385_v21  ;;  %481 = vmatmul.f32.vlgmr.msra.gmra.mxu0 %v1285_v35  ;;  %v248_v15 = vld [vmem:[#allocation2 + $0x3f8] sm:$0xff]  ;;  %v134_v16 = vld [vmem:[#allocation2 + $0x68] sm:$0xff]  ;;  %v245_v19 = vld [vmem:[#allocation2 + $0x3e0] sm:$0xff] }
  0x4c   :  { %553 = vmatpush.msrb.mxu0 %v334_v24  ;;  %592 = vmatpush.msrb.mxu2 %v433_v30  ;;  %v308_v17 = vld [vmem:[#allocation2 + $0x5d8] sm:$0xff]  ;;  %v194_v18 = vld [vmem:[#allocation2 + $0x248] sm:$0xff]  ;;  %v131_v20 = vld [vmem:[#allocation2 + $0x50] sm:$0xff] }
  0x4d   :  { %573 = vmatpush.msrb.mxu1 %v382_v25  ;;  %541 = vmatmul.f32.vlgmr.msra.gmra.mxu3 %v1290_v39  ;;  %v305_v21 = vld [vmem:[#allocation2 + $0x5c0] sm:$0xff]  ;;  %v191_v22 = vld [vmem:[#allocation2 + $0x230] sm:$0xff]  ;;  %v242_v23 = vld [vmem:[#allocation2 + $0x3c8] sm:$0xff] }
  0x4e   :  { %554 = vmatpush.msrb.mxu0 %v331_v28  ;;  %593 = vmatpush.msrb.mxu2 %v430_v34  ;;  %v128_v24 = vld [vmem:[#allocation2 + $0x38] sm:$0xff]  ;;  %v302_v25 = vld [vmem:[#allocation2 + $0x5a8] sm:$0xff]  ;;  %v239_v27 = vld [vmem:[#allocation2 + $0x3b0] sm:$0xff] }
  0x4f   :  { %574 = vmatpush.msrb.mxu1 %v379_v29  ;;  %609 = vmatpush.msrb.mxu3 %v155_v43  ;;  %v188_v26 = vld [vmem:[#allocation2 + $0x218] sm:$0xff]  ;;  %v125_v28 = vld [vmem:[#allocation2 + $0x20] sm:$0xff]  ;;  %v299_v29 = vld [vmem:[#allocation2 + $0x590] sm:$0xff] }
  0x50   :  { %555 = vmatpush.msrb.mxu0 %v328_v32  ;;  %594 = vmatpush.msrb.mxu2 %v427_v38  ;;  %v185_v30 = vld [vmem:[#allocation2 + $0x200] sm:$0xff]  ;;  %v236_v31 = vld [vmem:[#allocation2 + $0x398] sm:$0xff]  ;;  %v122_v32 = vld [vmem:[#allocation2 + $0x8] sm:$0xff] }
  0x51   :  { %575 = vmatpush.msrb.mxu1 %v376_v33  ;;  %521 = vmatmul.f32.vlgmr.msra.gmra.mxu2 %v1302_v49  ;;  %v296_v33 = vld [vmem:[#allocation2 + $0x578] sm:$0xff]  ;;  %v182_v34 = vld [vmem:[#allocation2 + $0x1e8] sm:$0xff]  ;;  %v293_v38 = vld [vmem:[#allocation2 + $0x560] sm:$0xff] }
  0x52   :  { %556 = vmatpush.msrb.mxu0 %v325_v36  ;;  %595 = vmatpush.msrb.mxu2 %v424_v42  ;;  %v233_v36 = vld [vmem:[#allocation2 + $0x380] sm:$0xff]  ;;  %v356_v42 = vld [vmem:[#allocation2 + $0x758] sm:$0xff]  ;;  %v290_v43 = vld [vmem:[#allocation2 + $0x548] sm:$0xff] }
  0x53   :  { %576 = vmatpush.msrb.mxu1 %v373_v37  ;;  %610 = vmatpush.msrb.mxu3 %v152_v53  ;;  %v359_v37 = vld [vmem:[#allocation2 + $0x770] sm:$0xff]  ;;  %v284_v53 = vld [vmem:[#allocation2 + $0x518] sm:$0xff] }
  0x54   :  { %557 = vmatpush.msrb.mxu0 %v322_v40  ;;  %596 = vmatpush.msrb.mxu2 %v421_v46  ;;  %v179_v40 = vld [vmem:[#allocation2 + $0x1d0] sm:$0xff]  ;;  %v353_v46 = vld [vmem:[#allocation2 + $0x740] sm:$0xff] }
  0x55   :  { %577 = vmatpush.msrb.mxu1 %v370_v41  ;;  %611 = vmatpush.msrb.mxu3 %v149_v59  ;;  %v230_v41 = vld [vmem:[#allocation2 + $0x368] sm:$0xff]  ;;  %v281_v59 = vld [vmem:[#allocation2 + $0x500] sm:$0xff] }
  0x56   :  { %558 = vmatpush.msrb.mxu0 %v319_v44  ;;  %501 = vmatmul.f32.vlgmr.msra.gmra.mxu1 %v1297_v47  ;;  %v176_v44 = vld [vmem:[#allocation2 + $0x1b8] sm:$0xff] }
  0x57   :  { %578 = vmatpush.msrb.mxu1 %v367_v45  ;;  %597 = vmatpush.msrb.mxu2 %v418_v51  ;;  %v227_v45 = vld [vmem:[#allocation2 + $0x350] sm:$0xff]  ;;  %v224_v51 = vld [vmem:[#allocation2 + $0x338] sm:$0xff] }
  0x58   :  { %559 = vmatpush.msrb.mxu0 %v316_v48  ;;  %612 = vmatpush.msrb.mxu3 %v146_v63  ;;  %v287_v48 = vld [vmem:[#allocation2 + $0x530] sm:$0xff]  ;;  %v278_v63 = vld [vmem:[#allocation2 + $0x4e8] sm:$0xff] }
  0x59   :  { %579 = vmatpush.msrb.mxu1 %v364_v50  ;;  %598 = vmatpush.msrb.mxu2 %v415_v56  ;;  %v173_v50 = vld [vmem:[#allocation2 + $0x1a0] sm:$0xff]  ;;  %v347_v56 = vld [vmem:[#allocation2 + $0x710] sm:$0xff] }
  0x5a   :  { %560 = vmatpush.msrb.mxu0 %v313_v52  ;;  %613 = vmatpush.msrb.mxu3 %v143_v5  ;;  %v350_v52 = vld [vmem:[#allocation2 + $0x728] sm:$0xff]  ;;  %v275_v5 = vld [vmem:[#allocation2 + $0x4d0] sm:$0xff] }
  0x5b   :  { %580 = vmatpush.msrb.mxu1 %v361_v55  ;;  %599 = vmatpush.msrb.mxu2 %v412_v60  ;;  %v221_v55 = vld [vmem:[#allocation2 + $0x320] sm:$0xff]  ;;  %v344_v60 = vld [vmem:[#allocation2 + $0x6f8] sm:$0xff] }
  0x5c   :  { %625 = vmatpush.msra.mxu0 %v215_v54  ;;  %614 = vmatpush.msrb.mxu3 %v140_v9  ;;  %v170_v54 = vld [vmem:[#allocation2 + $0x188] sm:$0xff]  ;;  %v449_v9 = vld [vmem:[#allocation2 + $0xa40] sm:$0xff] }
  0x5d   :  { %645 = vmatpush.msra.mxu1 %v263_v57  ;;  %600 = vmatpush.msrb.mxu2 %v409_v0  ;;  %v407_v57 = vld [vmem:[#allocation2 + $0x8f0] sm:$0xff]  ;;  %v341_v0 = vld [vmem:[#allocation2 + $0x6e0] sm:$0xff] }
  0x5e   :  { %626 = vmatpush.msra.mxu0 %v212_v58  ;;  %601 = vmatmul.f32.vlgmr.msrb.gmra.mxu2 %v1309_v2  ;;  %v218_v58 = vld [vmem:[#allocation2 + $0x308] sm:$0xff] }
  0x5f   :  { %646 = vmatpush.msra.mxu1 %v260_v61  ;;  %561 = vmatmul.f32.vlgmr.msrb.gmra.mxu0 %v1314_v4  ;;  %v404_v61 = vld [vmem:[#allocation2 + $0x8d8] sm:$0xff] }
  0x60   :  { %627 = vmatpush.msra.mxu0 %v209_v62  ;;  %581 = vmatmul.f32.vlgmr.msrb.gmra.mxu1 %v1320_v8  ;;  %v455_v62 = vld [vmem:[#allocation2 + $0xa70] sm:$0xff] }
  0x61   :  { %647 = vmatpush.msra.mxu1 %v257_v1  ;;  %615 = vmatpush.msrb.mxu3 %v137_v12  ;;  %v401_v1 = vld [vmem:[#allocation2 + $0x8c0] sm:$0xff]  ;;  %v446_v12 = vld [vmem:[#allocation2 + $0xa28] sm:$0xff] }
  0x62   :  { %628 = vmatpush.msra.mxu0 %v206_v3  ;;  %665 = vmatpush.msra.mxu2 %v311_v13  ;;  %v452_v3 = vld [vmem:[#allocation2 + $0xa58] sm:$0xff] }
  0x63   :  { %648 = vmatpush.msra.mxu1 %v254_v7  ;;  %616 = vmatpush.msrb.mxu3 %v134_v16  ;;  %v398_v7 = vld [vmem:[#allocation2 + $0x8a8] sm:$0xff]  ;;  %v272_v13 = vld [vmem:[#allocation2 + $0x4b8] sm:$0xff]  ;;  %v443_v16 = vld [vmem:[#allocation2 + $0xa10] sm:$0xff] }
  0x64   :  { %629 = vmatpush.msra.mxu0 %v203_v6  ;;  %666 = vmatpush.msra.mxu2 %v308_v17  ;;  %v338_v6 = vld [vmem:[#allocation2 + $0x6c8] sm:$0xff]  ;;  %v269_v17 = vld [vmem:[#allocation2 + $0x4a0] sm:$0xff] }
  0x65   :  { %649 = vmatpush.msra.mxu1 %v251_v11  ;;  %617 = vmatpush.msrb.mxu3 %v131_v20  ;;  %v395_v11 = vld [vmem:[#allocation2 + $0x890] sm:$0xff]  ;;  %v440_v20 = vld [vmem:[#allocation2 + $0x9f8] sm:$0xff] }
  0x66   :  { %630 = vmatpush.msra.mxu0 %v200_v10  ;;  %667 = vmatpush.msra.mxu2 %v305_v21  ;;  %v335_v10 = vld [vmem:[#allocation2 + $0x6b0] sm:$0xff]  ;;  %v266_v21 = vld [vmem:[#allocation2 + $0x488] sm:$0xff] }
  0x67   :  { %650 = vmatpush.msra.mxu1 %v248_v15  ;;  %618 = vmatpush.msrb.mxu3 %v128_v24  ;;  %v392_v15 = vld [vmem:[#allocation2 + $0x878] sm:$0xff]  ;;  %v437_v24 = vld [vmem:[#allocation2 + $0x9e0] sm:$0xff] }
  0x68   :  { %631 = vmatpush.msra.mxu0 %v197_v14  ;;  %668 = vmatpush.msra.mxu2 %v302_v25  ;;  %v332_v14 = vld [vmem:[#allocation2 + $0x698] sm:$0xff]  ;;  %v323_v25 = vld [vmem:[#allocation2 + $0x650] sm:$0xff] }
  0x69   :  { %651 = vmatpush.msra.mxu1 %v245_v19  ;;  %619 = vmatpush.msrb.mxu3 %v125_v28  ;;  %v389_v19 = vld [vmem:[#allocation2 + $0x860] sm:$0xff]  ;;  %v168_v28 = vld [vmem:[#allocation2 + $0x178] sm:$0xff] }
  0x6a   :  { %632 = vmatpush.msra.mxu0 %v194_v18  ;;  %669 = vmatpush.msra.mxu2 %v299_v29  ;;  %v329_v18 = vld [vmem:[#allocation2 + $0x680] sm:$0xff]  ;;  %v320_v29 = vld [vmem:[#allocation2 + $0x638] sm:$0xff] }
  0x6b   :  { %652 = vmatpush.msra.mxu1 %v242_v23  ;;  %620 = vmatpush.msrb.mxu3 %v122_v32  ;;  %v386_v23 = vld [vmem:[#allocation2 + $0x848] sm:$0xff]  ;;  %v317_v32 = vld [vmem:[#allocation2 + $0x620] sm:$0xff] }
  0x6c   :  { %633 = vmatpush.msra.mxu0 %v191_v22  ;;  %670 = vmatpush.msra.mxu2 %v296_v33  ;;  %v326_v22 = vld [vmem:[#allocation2 + $0x668] sm:$0xff]  ;;  %v377_v33 = vld [vmem:[#allocation2 + $0x800] sm:$0xff] }
  0x6d   :  { %653 = vmatpush.msra.mxu1 %v239_v27  ;;  %685 = vmatpush.msra.mxu3 %v359_v37  ;;  %v434_v27 = vld [vmem:[#allocation2 + $0x9c8] sm:$0xff] }
  0x6e   :  { %634 = vmatpush.msra.mxu0 %v188_v26  ;;  %671 = vmatpush.msra.mxu2 %v293_v38  ;;  %v383_v26 = vld [vmem:[#allocation2 + $0x830] sm:$0xff]  ;;  %v314_v37 = vld [vmem:[#allocation2 + $0x608] sm:$0xff] }
  0x6f   :  { %654 = vmatpush.msra.mxu1 %v236_v31  ;;  %686 = vmatpush.msra.mxu3 %v356_v42  ;;  %v431_v31 = vld [vmem:[#allocation2 + $0x9b0] sm:$0xff]  ;;  %v374_v38 = vld [vmem:[#allocation2 + $0x7e8] sm:$0xff] }
  0x70   :  { %635 = vmatpush.msra.mxu0 %v185_v30  ;;  %672 = vmatpush.msra.mxu2 %v290_v43  ;;  %v380_v30 = vld [vmem:[#allocation2 + $0x818] sm:$0xff]  ;;  %v371_v42 = vld [vmem:[#allocation2 + $0x7d0] sm:$0xff]  ;;  %v422_v43 = vld [vmem:[#allocation2 + $0x968] sm:$0xff] }
  0x71   :  { %655 = vmatpush.msra.mxu1 %v233_v36  ;;  %687 = vmatpush.msra.mxu3 %v353_v46  ;;  %v165_v36 = vld [vmem:[#allocation2 + $0x160] sm:$0xff]  ;;  %v368_v46 = vld [vmem:[#allocation2 + $0x7b8] sm:$0xff] }
  0x72   :  { %636 = vmatpush.msra.mxu0 %v182_v34  ;;  %673 = vmatpush.msra.mxu2 %v287_v48  ;;  %v428_v34 = vld [vmem:[#allocation2 + $0x998] sm:$0xff]  ;;  %v419_v48 = vld [vmem:[#allocation2 + $0x950] sm:$0xff] }
  0x73   :  { %656 = vmatpush.msra.mxu1 %v230_v41  ;;  %688 = vmatpush.msra.mxu3 %v350_v52  ;;  %v216_v41 = vld [vmem:[#allocation2 + $0x2f8] sm:$0xff]  ;;  %v365_v52 = vld [vmem:[#allocation2 + $0x7a0] sm:$0xff] }
  0x74   :  { %637 = vmatpush.msra.mxu0 %v179_v40  ;;  %674 = vmatpush.msra.mxu2 %v284_v53  ;;  %v425_v40 = vld [vmem:[#allocation2 + $0x980] sm:$0xff]  ;;  %v416_v53 = vld [vmem:[#allocation2 + $0x938] sm:$0xff] }
  0x75   :  { %657 = vmatpush.msra.mxu1 %v227_v45  ;;  %689 = vmatpush.msra.mxu3 %v347_v56  ;;  %v213_v45 = vld [vmem:[#allocation2 + $0x2e0] sm:$0xff]  ;;  %v362_v56 = vld [vmem:[#allocation2 + $0x788] sm:$0xff] }
  0x76   :  { %638 = vmatpush.msra.mxu0 %v176_v44  ;;  %675 = vmatpush.msra.mxu2 %v281_v59  ;;  %v162_v44 = vld [vmem:[#allocation2 + $0x148] sm:$0xff]  ;;  %v204_v59 = vld [vmem:[#allocation2 + $0x298] sm:$0xff] }
  0x77   :  { %658 = vmatpush.msra.mxu1 %v224_v51  ;;  %690 = vmatpush.msra.mxu3 %v344_v60  ;;  %v210_v51 = vld [vmem:[#allocation2 + $0x2c8] sm:$0xff]  ;;  %v264_v60 = vld [vmem:[#allocation2 + $0x478] sm:$0xff] }
  0x78   :  { %639 = vmatpush.msra.mxu0 %v173_v50  ;;  %676 = vmatpush.msra.mxu2 %v278_v63  ;;  %v159_v50 = vld [vmem:[#allocation2 + $0x130] sm:$0xff]  ;;  %v201_v63 = vld [vmem:[#allocation2 + $0x280] sm:$0xff] }
  0x79   :  { %659 = vmatpush.msra.mxu1 %v221_v55  ;;  %691 = vmatpush.msra.mxu3 %v341_v0  ;;  %v207_v55 = vld [vmem:[#allocation2 + $0x2b0] sm:$0xff]  ;;  %v261_v0 = vld [vmem:[#allocation2 + $0x460] sm:$0xff] }
  0x7a   :  { %640 = vmatpush.msra.mxu0 %v170_v54  ;;  %677 = vmatpush.msra.mxu2 %v275_v5  ;;  %v156_v54 = vld [vmem:[#allocation2 + $0x118] sm:$0xff] }
  0x7b   :  { %660 = vmatpush.msra.mxu1 %v218_v58  ;;  %692 = vmatpush.msra.mxu3 %v338_v6  ;;  %v153_v58 = vld [vmem:[#allocation2 + $0x100] sm:$0xff]  ;;  %v312_v5 = vld [vmem:[#allocation2 + $0x5f8] sm:$0xff]  ;;  %v258_v6 = vld [vmem:[#allocation2 + $0x448] sm:$0xff] }
  0x7c   :  { %705 = vmatpush.msrb.mxu0 %v407_v57  ;;  %621 = vmatmul.f32.vlgmr.msrb.gmra.mxu3 %v1285_v35  ;;  %v413_v57 = vld [vmem:[#allocation2 + $0x920] sm:$0xff] }
  0x7d   :  { %725 = vmatpush.msrb.mxu1 %v455_v62  ;;  %693 = vmatpush.msra.mxu3 %v335_v10  ;;  %v150_v62 = vld [vmem:[#allocation2 + $0xe8] sm:$0xff]  ;;  %v309_v10 = vld [vmem:[#allocation2 + $0x5e0] sm:$0xff] }
  0x7e   :  { %706 = vmatpush.msrb.mxu0 %v404_v61  ;;  %678 = vmatpush.msra.mxu2 %v272_v13  ;;  %v410_v61 = vld [vmem:[#allocation2 + $0x908] sm:$0xff]  ;;  %v192_v13 = vld [vmem:[#allocation2 + $0x238] sm:$0xff] }
  0x7f   :  { %726 = vmatpush.msrb.mxu1 %v452_v3  ;;  %694 = vmatpush.msra.mxu3 %v332_v14  ;;  %v198_v3 = vld [vmem:[#allocation2 + $0x268] sm:$0xff] }
  0x80   :  { %707 = vmatpush.msrb.mxu0 %v401_v1  ;;  %679 = vmatpush.msra.mxu2 %v269_v17  ;;  %v147_v1 = vld [vmem:[#allocation2 + $0xd0] sm:$0xff]  ;;  %v306_v14 = vld [vmem:[#allocation2 + $0x5c8] sm:$0xff]  ;;  %v189_v17 = vld [vmem:[#allocation2 + $0x220] sm:$0xff] }
  0x81   :  { %727 = vmatpush.msrb.mxu1 %v449_v9  ;;  %695 = vmatpush.msra.mxu3 %v329_v18  ;;  %v195_v9 = vld [vmem:[#allocation2 + $0x250] sm:$0xff] }
  0x82   :  { %708 = vmatpush.msrb.mxu0 %v398_v7  ;;  %680 = vmatpush.msra.mxu2 %v266_v21  ;;  %v144_v7 = vld [vmem:[#allocation2 + $0xb8] sm:$0xff]  ;;  %v303_v18 = vld [vmem:[#allocation2 + $0x5b0] sm:$0xff]  ;;  %v186_v21 = vld [vmem:[#allocation2 + $0x208] sm:$0xff] }
  0x83   :  { %728 = vmatpush.msrb.mxu1 %v446_v12  ;;  %696 = vmatpush.msra.mxu3 %v326_v22  ;;  %v141_v12 = vld [vmem:[#allocation2 + $0xa0] sm:$0xff]  ;;  %v300_v22 = vld [vmem:[#allocation2 + $0x598] sm:$0xff] }
  0x84   :  { %709 = vmatpush.msrb.mxu0 %v395_v11  ;;  %681 = vmatmul.f32.vlgmr.msra.gmra.mxu2 %v1290_v39  ;;  %v255_v11 = vld [vmem:[#allocation2 + $0x430] sm:$0xff] }
  0x85   :  { %729 = vmatpush.msrb.mxu1 %v443_v16  ;;  %697 = vmatpush.msra.mxu3 %v323_v25  ;;  %v138_v16 = vld [vmem:[#allocation2 + $0x88] sm:$0xff]  ;;  %v183_v25 = vld [vmem:[#allocation2 + $0x1f0] sm:$0xff] }
  0x86   :  { %710 = vmatpush.msrb.mxu0 %v392_v15  ;;  %745 = vmatpush.msrb.mxu2 %v168_v28  ;;  %v252_v15 = vld [vmem:[#allocation2 + $0x418] sm:$0xff]  ;;  %v129_v28 = vld [vmem:[#allocation2 + $0x40] sm:$0xff] }
  0x87   :  { %730 = vmatpush.msrb.mxu1 %v440_v20  ;;  %698 = vmatpush.msra.mxu3 %v320_v29  ;;  %v135_v20 = vld [vmem:[#allocation2 + $0x70] sm:$0xff]  ;;  %v180_v29 = vld [vmem:[#allocation2 + $0x1d8] sm:$0xff] }
  0x88   :  { %711 = vmatpush.msrb.mxu0 %v389_v19  ;;  %746 = vmatpush.msrb.mxu2 %v165_v36  ;;  %v249_v19 = vld [vmem:[#allocation2 + $0x400] sm:$0xff] }
  0x89   :  { %731 = vmatpush.msrb.mxu1 %v437_v24  ;;  %641 = vmatmul.f32.vlgmr.msra.gmra.mxu0 %v1297_v47  ;;  %v132_v24 = vld [vmem:[#allocation2 + $0x58] sm:$0xff]  ;;  %v237_v36 = vld [vmem:[#allocation2 + $0x3a0] sm:$0xff] }
  0x8a   :  { %712 = vmatpush.msrb.mxu0 %v386_v23  ;;  %699 = vmatpush.msra.mxu3 %v317_v32  ;;  %v246_v23 = vld [vmem:[#allocation2 + $0x3e8] sm:$0xff] }
  0x8b   :  { %732 = vmatpush.msrb.mxu1 %v434_v27  ;;  %747 = vmatpush.msrb.mxu2 %v162_v44  ;;  %v243_v27 = vld [vmem:[#allocation2 + $0x3d0] sm:$0xff]  ;;  %v126_v32 = vld [vmem:[#allocation2 + $0x28] sm:$0xff]  ;;  %v357_v44 = vld [vmem:[#allocation2 + $0x760] sm:$0xff] }
  0x8c   :  { %713 = vmatpush.msrb.mxu0 %v383_v26  ;;  %700 = vmatpush.msra.mxu3 %v314_v37  ;;  %v297_v26 = vld [vmem:[#allocation2 + $0x580] sm:$0xff]  ;;  %v123_v37 = vld [vmem:[#allocation2 + $0x10] sm:$0xff] }
  0x8d   :  { %733 = vmatpush.msrb.mxu1 %v431_v31  ;;  %701 = vmatmul.f32.vlgmr.msra.gmra.mxu3 %v1314_v4  ;;  %v240_v31 = vld [vmem:[#allocation2 + $0x3b8] sm:$0xff] }
  0x8e   :  { %714 = vmatpush.msrb.mxu0 %v380_v30  ;;  %765 = vmatpush.msrb.mxu3 %v216_v41  ;;  %v294_v30 = vld [vmem:[#allocation2 + $0x568] sm:$0xff] }
  0x8f   :  { %734 = vmatpush.msrb.mxu1 %v428_v34  ;;  %748 = vmatpush.msrb.mxu2 %v159_v50  ;;  %v291_v34 = vld [vmem:[#allocation2 + $0x550] sm:$0xff]  ;;  %v234_v41 = vld [vmem:[#allocation2 + $0x388] sm:$0xff]  ;;  %v285_v50 = vld [vmem:[#allocation2 + $0x520] sm:$0xff] }
  0x90   :  { %715 = vmatpush.msrb.mxu0 %v377_v33  ;;  %661 = vmatmul.f32.vlgmr.msra.gmra.mxu1 %v1302_v49  ;;  %v177_v33 = vld [vmem:[#allocation2 + $0x1c0] sm:$0xff] }
  0x91   :  { %735 = vmatpush.msrb.mxu1 %v425_v40  ;;  %766 = vmatpush.msrb.mxu3 %v213_v45  ;;  %v360_v40 = vld [vmem:[#allocation2 + $0x778] sm:$0xff]  ;;  %v231_v45 = vld [vmem:[#allocation2 + $0x370] sm:$0xff] }
  0x92   :  { %716 = vmatpush.msrb.mxu0 %v374_v38  ;;  %749 = vmatpush.msrb.mxu2 %v156_v54  ;;  %v174_v38 = vld [vmem:[#allocation2 + $0x1a8] sm:$0xff] }
  0x93   :  { %736 = vmatpush.msrb.mxu1 %v422_v43  ;;  %767 = vmatpush.msrb.mxu3 %v210_v51  ;;  %v171_v43 = vld [vmem:[#allocation2 + $0x190] sm:$0xff]  ;;  %v228_v51 = vld [vmem:[#allocation2 + $0x358] sm:$0xff]  ;;  %v282_v54 = vld [vmem:[#allocation2 + $0x508] sm:$0xff] }
  0x94   :  { %717 = vmatpush.msrb.mxu0 %v371_v42  ;;  %750 = vmatpush.msrb.mxu2 %v153_v58  ;;  %v288_v42 = vld [vmem:[#allocation2 + $0x538] sm:$0xff]  ;;  %v279_v58 = vld [vmem:[#allocation2 + $0x4f0] sm:$0xff] }
  0x95   :  { %737 = vmatpush.msrb.mxu1 %v419_v48  ;;  %768 = vmatpush.msrb.mxu3 %v207_v55  ;;  %v354_v48 = vld [vmem:[#allocation2 + $0x748] sm:$0xff]  ;;  %v225_v55 = vld [vmem:[#allocation2 + $0x340] sm:$0xff] }
  0x96   :  { %718 = vmatpush.msrb.mxu0 %v368_v46  ;;  %751 = vmatpush.msrb.mxu2 %v150_v62  ;;  %v408_v46 = vld [vmem:[#allocation2 + $0x8f8] sm:$0xff] }
  0x97   :  { %738 = vmatpush.msrb.mxu1 %v416_v53  ;;  %769 = vmatpush.msrb.mxu3 %v204_v59  ;;  %v351_v53 = vld [vmem:[#allocation2 + $0x730] sm:$0xff]  ;;  %v222_v59 = vld [vmem:[#allocation2 + $0x328] sm:$0xff]  ;;  %v276_v62 = vld [vmem:[#allocation2 + $0x4d8] sm:$0xff] }
  0x98   :  { %719 = vmatpush.msrb.mxu0 %v365_v52  ;;  %752 = vmatpush.msrb.mxu2 %v147_v1  ;;  %v405_v52 = vld [vmem:[#allocation2 + $0x8e0] sm:$0xff]  ;;  %v456_v1 = vld [vmem:[#allocation2 + $0xa78] sm:$0xff] }
  0x99   :  { %739 = vmatpush.msrb.mxu1 %v413_v57  ;;  %770 = vmatpush.msrb.mxu3 %v201_v63  ;;  %v348_v57 = vld [vmem:[#allocation2 + $0x718] sm:$0xff]  ;;  %v219_v63 = vld [vmem:[#allocation2 + $0x310] sm:$0xff] }
  0x9a   :  { %720 = vmatpush.msrb.mxu0 %v362_v56  ;;  %753 = vmatpush.msrb.mxu2 %v144_v7  ;;  %v402_v56 = vld [vmem:[#allocation2 + $0x8c8] sm:$0xff]  ;;  %v339_v7 = vld [vmem:[#allocation2 + $0x6d0] sm:$0xff] }
  0x9b   :  { %721 = vmatmul.f32.vlgmr.msrb.gmra.mxu0 %v1320_v8  ;;  %740 = vmatpush.msrb.mxu1 %v410_v61  ;;  %v345_v61 = vld [vmem:[#allocation2 + $0x700] sm:$0xff] }
  0x9c   :  { %785 = vmatpush.msra.mxu0 %v264_v60  ;;  %741 = vmatmul.f32.vlgmr.msrb.gmra.mxu1 %v1309_v2  ;;  %v399_v60 = vld [vmem:[#allocation2 + $0x8b0] sm:$0xff] }
  0x9d   :  { %771 = vmatpush.msrb.mxu3 %v198_v3  ;;  %805 = vmatpush.msra.mxu1 %v312_v5  ;;  %v342_v3 = vld [vmem:[#allocation2 + $0x6e8] sm:$0xff]  ;;  %v393_v5 = vld [vmem:[#allocation2 + $0x880] sm:$0xff] }
  0x9e   :  { %786 = vmatpush.msra.mxu0 %v261_v0  ;;  %754 = vmatpush.msrb.mxu2 %v141_v12  ;;  %v396_v0 = vld [vmem:[#allocation2 + $0x898] sm:$0xff] }
  0x9f   :  { %772 = vmatpush.msrb.mxu3 %v195_v9  ;;  %806 = vmatpush.msra.mxu1 %v309_v10  ;;  %v390_v9 = vld [vmem:[#allocation2 + $0x868] sm:$0xff]  ;;  %v273_v10 = vld [vmem:[#allocation2 + $0x4c0] sm:$0xff]  ;;  %v336_v12 = vld [vmem:[#allocation2 + $0x6b8] sm:$0xff] }
  0xa0   :  { %787 = vmatpush.msra.mxu0 %v258_v6  ;;  %755 = vmatpush.msrb.mxu2 %v138_v16  ;;  %v453_v6 = vld [vmem:[#allocation2 + $0xa60] sm:$0xff] }
  0xa1   :  { %773 = vmatpush.msrb.mxu3 %v192_v13  ;;  %807 = vmatpush.msra.mxu1 %v306_v14  ;;  %v387_v13 = vld [vmem:[#allocation2 + $0x850] sm:$0xff]  ;;  %v270_v14 = vld [vmem:[#allocation2 + $0x4a8] sm:$0xff]  ;;  %v333_v16 = vld [vmem:[#allocation2 + $0x6a0] sm:$0xff] }
  0xa2   :  { %788 = vmatpush.msra.mxu0 %v255_v11  ;;  %756 = vmatpush.msrb.mxu2 %v135_v20  ;;  %v450_v11 = vld [vmem:[#allocation2 + $0xa48] sm:$0xff] }
  0xa3   :  { %774 = vmatpush.msrb.mxu3 %v189_v17  ;;  %808 = vmatpush.msra.mxu1 %v303_v18  ;;  %v384_v17 = vld [vmem:[#allocation2 + $0x838] sm:$0xff]  ;;  %v267_v18 = vld [vmem:[#allocation2 + $0x490] sm:$0xff]  ;;  %v330_v20 = vld [vmem:[#allocation2 + $0x688] sm:$0xff] }
  0xa4   :  { %789 = vmatpush.msra.mxu0 %v252_v15  ;;  %757 = vmatpush.msrb.mxu2 %v132_v24  ;;  %v447_v15 = vld [vmem:[#allocation2 + $0xa30] sm:$0xff]  ;;  %v378_v24 = vld [vmem:[#allocation2 + $0x808] sm:$0xff] }
  0xa5   :  { %775 = vmatpush.msrb.mxu3 %v186_v21  ;;  %809 = vmatpush.msra.mxu1 %v300_v22  ;;  %v381_v21 = vld [vmem:[#allocation2 + $0x820] sm:$0xff] }
  0xa6   :  { %790 = vmatpush.msra.mxu0 %v249_v19  ;;  %758 = vmatpush.msrb.mxu2 %v129_v28  ;;  %v444_v19 = vld [vmem:[#allocation2 + $0xa18] sm:$0xff]  ;;  %v441_v22 = vld [vmem:[#allocation2 + $0xa00] sm:$0xff]  ;;  %v375_v28 = vld [vmem:[#allocation2 + $0x7f0] sm:$0xff] }
  0xa7   :  { %776 = vmatpush.msrb.mxu3 %v183_v25  ;;  %810 = vmatpush.msra.mxu1 %v297_v26  ;;  %v902_v25 = vld [vmem:[#allocation6 + $0x70] sm:$0xff]  ;;  %v438_v26 = vld [vmem:[#allocation2 + $0x9e8] sm:$0xff] }
  0xa8   :  { %791 = vmatpush.msra.mxu0 %v246_v23  ;;  %759 = vmatpush.msrb.mxu2 %v126_v32  ;;  %v327_v23 = vld [vmem:[#allocation2 + $0x670] sm:$0xff]  ;;  %v372_v32 = vld [vmem:[#allocation2 + $0x7d8] sm:$0xff] }
  0xa9   :  { %777 = vmatpush.msrb.mxu3 %v180_v29  ;;  %811 = vmatpush.msra.mxu1 %v294_v30  ;;  %v901_v29 = vld [vmem:[#allocation6 + $0x68] sm:$0xff] }
  0xaa   :  { %792 = vmatpush.msra.mxu0 %v243_v27  ;;  %760 = vmatpush.msrb.mxu2 %v123_v37  ;;  %v324_v27 = vld [vmem:[#allocation2 + $0x658] sm:$0xff]  ;;  %v435_v30 = vld [vmem:[#allocation2 + $0x9d0] sm:$0xff]  ;;  %v369_v37 = vld [vmem:[#allocation2 + $0x7c0] sm:$0xff] }
  0xab   :  { %778 = vmatpush.msrb.mxu3 %v177_v33  ;;  %812 = vmatpush.msra.mxu1 %v291_v34  ;;  %v432_v33 = vld [vmem:[#allocation2 + $0x9b8] sm:$0xff]  ;;  %v900_v34 = vld [vmem:[#allocation6 + $0x60] sm:$0xff] }
  0xac   :  { %793 = vmatpush.msra.mxu0 %v240_v31  ;;  %825 = vmatpush.msra.mxu2 %v360_v40  ;;  %v321_v31 = vld [vmem:[#allocation2 + $0x640] sm:$0xff]  ;;  %v315_v40 = vld [vmem:[#allocation2 + $0x610] sm:$0xff] }
  0xad   :  { %779 = vmatpush.msrb.mxu3 %v174_v38  ;;  %813 = vmatpush.msra.mxu1 %v288_v42  ;;  %v429_v38 = vld [vmem:[#allocation2 + $0x9a0] sm:$0xff]  ;;  %v426_v42 = vld [vmem:[#allocation2 + $0x988] sm:$0xff] }
  0xae   :  { %794 = vmatpush.msra.mxu0 %v237_v36  ;;  %826 = vmatpush.msra.mxu2 %v357_v44  ;;  %v318_v36 = vld [vmem:[#allocation2 + $0x628] sm:$0xff]  ;;  %v1334_v44 = vld [vmem:[#allocation4] sm:$0x7] }
  0xaf   :  { %780 = vmatpush.msrb.mxu3 %v171_v43  ;;  %814 = vmatpush.msra.mxu1 %v285_v50  ;;  %v363_v43 = vld [vmem:[#allocation2 + $0x790] sm:$0xff]  ;;  %v459_v50 = vperm.slane %v1334_v44, 0 }
  0xb0   :  { %795 = vmatpush.msra.mxu0 %v234_v41  ;;  %827 = vmatpush.msra.mxu2 %v354_v48  ;;  %v366_v41 = vld [vmem:[#allocation2 + $0x7a8] sm:$0xff]  ;;  %v420_v48 = vld [vmem:[#allocation2 + $0x958] sm:$0xff] }
  0xb1   :  { %845 = vmatpush.msra.mxu3 %v408_v46  ;;  %815 = vmatpush.msra.mxu1 %v282_v54  ;;  %v919_v46 = vld [vmem:[#allocation6 + $0xf8] sm:$0xff]  ;;  %v897_v54 = vld [vmem:[#allocation6 + $0x48] sm:$0xff] }
  0xb2   :  { %796 = vmatpush.msra.mxu0 %v231_v45  ;;  %828 = vmatpush.msra.mxu2 %v351_v53  ;;  %v899_v45 = vld [vmem:[#allocation6 + $0x58] sm:$0xff] }
  0xb3   :  { %846 = vmatpush.msra.mxu3 %v405_v52  ;;  %816 = vmatpush.msra.mxu1 %v279_v58  ;;  %v918_v52 = vld [vmem:[#allocation6 + $0xf0] sm:$0xff]  ;;  %v417_v53 = vld [vmem:[#allocation2 + $0x940] sm:$0xff] }
  0xb4   :  { %797 = vmatpush.msra.mxu0 %v228_v51  ;;  %829 = vmatpush.msra.mxu2 %v348_v57  ;;  %v916_v58 = vld [vmem:[#allocation6 + $0xe0] sm:$0xff] }
  0xb5   :  { %847 = vmatpush.msra.mxu3 %v402_v56  ;;  %817 = vmatpush.msra.mxu1 %v276_v62  ;;  %v894_v62 = vld [vmem:[#allocation6 + $0x30] sm:$0xff] }
  0xb6   :  { %798 = vmatpush.msra.mxu0 %v225_v55  ;;  %830 = vmatpush.msra.mxu2 %v345_v61  ;;  %v414_v55 = vld [vmem:[#allocation2 + $0x928] sm:$0xff]  ;;  %v915_v61 = vld [vmem:[#allocation6 + $0xd8] sm:$0xff] }
  0xb7   :  { %848 = vmatpush.msra.mxu3 %v399_v60  ;;  %761 = vmatmul.f32.vlgmr.msrb.gmra.mxu2 %v1285_v35  ;;  %v903_v35 = vld [vmem:[#allocation6 + $0x78] sm:$0xff] }
  0xb8   :  { %799 = vmatpush.msra.mxu0 %v222_v59  ;;  %831 = vmatpush.msra.mxu2 %v342_v3  ;;  %v411_v59 = vld [vmem:[#allocation2 + $0x910] sm:$0xff] }
  0xb9   :  { %849 = vmatpush.msra.mxu3 %v396_v0  ;;  %818 = vmatpush.msra.mxu1 %v273_v10  ;;  %v893_v3 = vld [vmem:[#allocation6 + $0x28] sm:$0xff] }
  0xba   :  { %800 = vmatpush.msra.mxu0 %v219_v63  ;;  %832 = vmatpush.msra.mxu2 %v339_v7  ;;  %v914_v63 = vld [vmem:[#allocation6 + $0xd0] sm:$0xff]  ;;  %v892_v7 = vld [vmem:[#allocation6 + $0x20] sm:$0xff] }
  0xbb   :  { %850 = vmatpush.msra.mxu3 %v393_v5  ;;  %819 = vmatpush.msra.mxu1 %v270_v14 }
  0xbc   :  { %865 = vmatpush.msrb.mxu0 %v456_v1  ;;  %833 = vmatpush.msra.mxu2 %v336_v12 }
  0xbd   :  { %851 = vmatpush.msra.mxu3 %v390_v9  ;;  %820 = vmatpush.msra.mxu1 %v267_v18  ;;  %v888_v18 = vld [vmem:[#allocation6] sm:$0xff] }
  0xbe   :  { %866 = vmatpush.msrb.mxu0 %v453_v6  ;;  %834 = vmatpush.msra.mxu2 %v333_v16  ;;  %v913_v6 = vld [vmem:[#allocation6 + $0xc8] sm:$0xff] }
  0xbf   :  { %852 = vmatpush.msra.mxu3 %v387_v13  ;;  %940 = vmatpush.msrb.mxu1 %v903_v35  ;;  %v910_v35 = vld [vmem:[#allocation6 + $0xb0] sm:$0xff] }
  0xc0   :  { %867 = vmatpush.msrb.mxu0 %v450_v11  ;;  %835 = vmatpush.msra.mxu2 %v330_v20  ;;  %v891_v11 = vld [vmem:[#allocation6 + $0x18] sm:$0xff] }
  0xc1   :  { %853 = vmatpush.msra.mxu3 %v384_v17  ;;  %941 = vmatpush.msrb.mxu1 %v902_v25  ;;  %v906_v25 = vld [vmem:[#allocation6 + $0x90] sm:$0xff] }
  0xc2   :  { %868 = vmatpush.msrb.mxu0 %v447_v15  ;;  %836 = vmatpush.msra.mxu2 %v327_v23  ;;  %v889_v15 = vld [vmem:[#allocation6 + $0x8] sm:$0xff]  ;;  %v908_v23 = vld [vmem:[#allocation6 + $0xa0] sm:$0xff] }
  0xc3   :  { %854 = vmatpush.msra.mxu3 %v381_v21  ;;  %942 = vmatpush.msrb.mxu1 %v901_v29  ;;  %v911_v21 = vld [vmem:[#allocation6 + $0xb8] sm:$0xff]  ;;  %v934_v29 = vld [vmem:[#allocation6 + $0x170] sm:$0xff] }
  0xc4   :  { %869 = vmatpush.msrb.mxu0 %v444_v19  ;;  %837 = vmatpush.msra.mxu2 %v324_v27  ;;  %v912_v19 = vld [vmem:[#allocation6 + $0xc0] sm:$0xff] }
  0xc5   :  { %855 = vmatpush.msra.mxu3 %v378_v24  ;;  %943 = vmatpush.msrb.mxu1 %v900_v34  ;;  %v907_v24 = vld [vmem:[#allocation6 + $0x98] sm:$0xff]  ;;  %v904_v27 = vld [vmem:[#allocation6 + $0x80] sm:$0xff] }
  0xc6   :  { %870 = vmatpush.msrb.mxu0 %v441_v22  ;;  %781 = vmatmul.f32.vlgmr.msrb.gmra.mxu3 %v1297_v47  ;;  %v423_v47 = vld [vmem:[#allocation2 + $0x970] sm:$0xff] }
  0xc7   :  { %856 = vmatpush.msra.mxu3 %v375_v28  ;;  %838 = vmatpush.msra.mxu2 %v321_v31  ;;  %v909_v22 = vld [vmem:[#allocation6 + $0xa8] sm:$0xff]  ;;  %v935_v28 = vld [vmem:[#allocation6 + $0x178] sm:$0xff]  ;;  %v932_v31 = vld [vmem:[#allocation6 + $0x160] sm:$0xff] }
  0xc8   :  { %871 = vmatpush.msrb.mxu0 %v438_v26  ;;  %821 = vmatmul.f32.vlgmr.msra.gmra.mxu1 %v1290_v39  ;;  %v898_v39 = vld [vmem:[#allocation6 + $0x50] sm:$0xff]  ;;  %v482_v51 = vpop.f32.mrf.mxu0  ;;  %v905_v26 = vld [vmem:[#allocation6 + $0x88] sm:$0xff] }
  0xc9   :  { %857 = vmatpush.msra.mxu3 %v372_v32  ;;  %839 = vmatpush.msra.mxu2 %v318_v36  ;;  %v483_v56 = vadd.f32 %v482_v51, %v459_v50  ;;  %v931_v32 = vld [vmem:[#allocation6 + $0x158] sm:$0xff]  ;;  %v930_v36 = vld [vmem:[#allocation6 + $0x150] sm:$0xff] }
  0xca   :  { %872 = vmatpush.msrb.mxu0 %v435_v30  ;;  %944 = vmatpush.msrb.mxu1 %v899_v45  ;;  %v933_v30 = vld [vmem:[#allocation6 + $0x168] sm:$0xff] }
  0xcb   :  { %858 = vmatpush.msra.mxu3 %v369_v37  ;;  %840 = vmatpush.msra.mxu2 %v315_v40  ;;  %v929_v37 = vld [vmem:[#allocation6 + $0x148] sm:$0xff] }
  0xcc   :  { %873 = vmatpush.msrb.mxu0 %v432_v33  ;;  %841 = vmatmul.f32.vlgmr.msra.gmra.mxu2 %v1314_v4  ;;  %v917_v4 = vld [vmem:[#allocation6 + $0xe8] sm:$0xff]  ;;  %v460_v33 = vperm.slane %v1334_v44, 1 }
  0xcd   :  { %859 = vmatpush.msra.mxu3 %v366_v41  ;;  %801 = vmatmul.f32.vlgmr.msra.gmra.mxu0 %v1302_v49  ;;  %v896_v49 = vld [vmem:[#allocation6 + $0x40] sm:$0xff] }
  0xce   :  { %874 = vmatpush.msrb.mxu0 %v429_v38  ;;  %960 = vmatpush.msrb.mxu2 %v919_v46 }
  0xcf   :  { %860 = vmatpush.msra.mxu3 %v363_v43  ;;  %945 = vmatpush.msrb.mxu1 %v898_v39 }
  0xd0   :  { %875 = vmatpush.msrb.mxu0 %v426_v42  ;;  %861 = vmatmul.f32.vlgmr.msra.gmra.mxu3 %v1320_v8  ;;  %v895_v8 = vld [vmem:[#allocation6 + $0x38] sm:$0xff]  ;;  %v542_v1 = vpop.f32.mrf.mxu3 }
  0xd1   :  { %961 = vmatpush.msrb.mxu2 %v918_v52  ;;  %946 = vmatpush.msrb.mxu1 %v897_v54  ;;  %v928_v54 = vld [vmem:[#allocation6 + $0x140] sm:$0xff] }
  0xd2   :  { %876 = vmatpush.msrb.mxu0 %v423_v47  ;;  %980 = vmatpush.msrb.mxu3 %v935_v28  ;;  %v1060_v28 = vld [vmem:[#allocation7] ss:$0 sm:$0xff] }
  0xd3   :  { %v502_v57 = vpop.f32.mrf.mxu1  ;;  %962 = vmatpush.msrb.mxu2 %v917_v4  ;;  %947 = vmatpush.msrb.mxu1 %v896_v49  ;;  %v927_v4 = vld [vmem:[#allocation6 + $0x138] sm:$0xff]  ;;  %v924_v49 = vld [vmem:[#allocation6 + $0x120] sm:$0xff] }
  0xd4   :  { %877 = vmatpush.msrb.mxu0 %v420_v48  ;;  %v503_v60 = vadd.f32 %v502_v57, %v483_v56  ;;  %v522_v0 = vpop.f32.mrf.mxu2  ;;  %981 = vmatpush.msrb.mxu3 %v934_v29  ;;  %v925_v56 = vld [vmem:[#allocation6 + $0x128] sm:$0xff]  ;;  %v923_v57 = vld [vmem:[#allocation6 + $0x118] sm:$0xff] }
  0xd5   :  { %963 = vmatpush.msrb.mxu2 %v916_v58  ;;  %948 = vmatpush.msrb.mxu1 %v895_v8  ;;  %v922_v58 = vld [vmem:[#allocation6 + $0x110] sm:$0xff]  ;;  %v920_v8 = vld [vmem:[#allocation6 + $0x100] sm:$0xff] }
  0xd6   :  { %878 = vmatpush.msrb.mxu0 %v417_v53  ;;  %v523_v5 = vadd.f32 %v522_v0, %v503_v60  ;;  %982 = vmatpush.msrb.mxu3 %v933_v30  ;;  %v461_v60 = vperm.slane %v1334_v44, 2  ;;  %v1014_v44 = vld [vmem:[#allocation9 + $0x68] sm:$0xff] }
  0xd7   :  { %964 = vmatpush.msrb.mxu2 %v915_v61  ;;  %949 = vmatpush.msrb.mxu1 %v894_v62 }
  0xd8   :  { %879 = vmatpush.msrb.mxu0 %v414_v55  ;;  %v543_v9 = vadd.f32 %v542_v1, %v523_v5  ;;  %983 = vmatpush.msrb.mxu3 %v932_v31  ;;  %v926_v55 = vld [vmem:[#allocation6 + $0x130] sm:$0xff] }
  0xd9   :  { %965 = vmatpush.msrb.mxu2 %v914_v63  ;;  %950 = vmatpush.msrb.mxu1 %v893_v3 }
  0xda   :  { %880 = vmatpush.msrb.mxu0 %v411_v59  ;;  %984 = vmatpush.msrb.mxu3 %v931_v32  ;;  %v921_v59 = vld [vmem:[#allocation6 + $0x108] sm:$0xff] }
  0xdb   :  { %881 = vmatmul.f32.vlgmr.msrb.gmra.mxu0 %v1309_v2  ;;  %966 = vmatpush.msrb.mxu2 %v913_v6  ;;  %v890_v2 = vld [vmem:[#allocation6 + $0x10] sm:$0xff] }
  0xdc   :  { %v562_v10 = vpop.f32.mrf.mxu0  ;;  %951 = vmatpush.msrb.mxu1 %v892_v7  ;;  %985 = vmatpush.msrb.mxu3 %v930_v36 }
  0xdd   :  { %v563_v12 = vadd.f32 %v562_v10, %v543_v9  ;;  %v582_v13 = vpop.f32.mrf.mxu1  ;;  %967 = vmatpush.msrb.mxu2 %v912_v19  ;;  %v1010_v19 = vld [vmem:[#allocation9 + $0x48] sm:$0xff] }
  0xde   :  { %952 = vmatpush.msrb.mxu1 %v891_v11  ;;  %986 = vmatpush.msrb.mxu3 %v929_v37  ;;  %v1061_v37 = vld [vmem:[#allocation10] ss:$0 sm:$0xff] }
  0xdf   :  { %v583_v14 = vadd.f32 %v582_v13, %v563_v12  ;;  %968 = vmatpush.msrb.mxu2 %v911_v21  ;;  %v1008_v21 = vld [vmem:[#allocation9 + $0x38] sm:$0xff] }
  0xe0   :  { %953 = vmatpush.msrb.mxu1 %v890_v2  ;;  %987 = vmatpush.msrb.mxu3 %v928_v54 }
  0xe1   :  { %v602_v16 = vpop.f32.mrf.mxu2  ;;  %969 = vmatpush.msrb.mxu2 %v910_v35  ;;  %v1007_v35 = vld [vmem:[#allocation9 + $0x30] sm:$0xff] }
  0xe2   :  { %v603_v17 = vadd.f32 %v602_v16, %v583_v14  ;;  %954 = vmatpush.msrb.mxu1 %v889_v15  ;;  %988 = vmatpush.msrb.mxu3 %v927_v4  ;;  %v1016_v14 = vld [vmem:[#allocation9 + $0x78] sm:$0xff]  ;;  %v1015_v15 = vld [vmem:[#allocation9 + $0x70] sm:$0xff]  ;;  %v1013_v16 = vld [vmem:[#allocation9 + $0x60] sm:$0xff] }
  0xe3   :  { %970 = vmatpush.msrb.mxu2 %v909_v22  ;;  %1021 = vmatpush.msra.mxu0 %v1016_v14  ;;  %v1006_v22 = vld [vmem:[#allocation9 + $0x28] sm:$0xff] }
  0xe4   :  { %v885_v20 = vmax.f32 %v603_v17, 0.0  ;;  %955 = vmatpush.msrb.mxu1 %v888_v18  ;;  %989 = vmatpush.msrb.mxu3 %v926_v55  ;;  %v1012_v17 = vld [vmem:[#allocation9 + $0x58] sm:$0xff]  ;;  %v1011_v18 = vld [vmem:[#allocation9 + $0x50] sm:$0xff] }
  0xe5   :  { %971 = vmatpush.msrb.mxu2 %v908_v23  ;;  %1022 = vmatpush.msra.mxu0 %v1015_v15  ;;  %v1005_v23 = vld [vmem:[#allocation9 + $0x20] sm:$0xff] }
  0xe6   :  { %956 = vmatmul.f32.vlgmr.msrb.gmra.mxu1 %v885_v20  ;;  %990 = vmatpush.msrb.mxu3 %v925_v56  ;;  %v1009_v20 = vld [vmem:[#allocation9 + $0x40] sm:$0xff] }
  0xe7   :  { %972 = vmatpush.msrb.mxu2 %v907_v24  ;;  %1023 = vmatpush.msra.mxu0 %v1014_v44  ;;  %v1004_v24 = vld [vmem:[#allocation9 + $0x18] sm:$0xff] }
  0xe8   :  { %991 = vmatpush.msrb.mxu3 %v924_v49 }
  0xe9   :  { %973 = vmatpush.msrb.mxu2 %v906_v25  ;;  %1024 = vmatpush.msra.mxu0 %v1013_v16  ;;  %v1003_v25 = vld [vmem:[#allocation9 + $0x10] sm:$0xff] }
  0xea   :  { %992 = vmatpush.msrb.mxu3 %v923_v57 }
  0xeb   :  { %974 = vmatpush.msrb.mxu2 %v905_v26  ;;  %1025 = vmatpush.msra.mxu0 %v1012_v17  ;;  %v1002_v26 = vld [vmem:[#allocation9 + $0x8] sm:$0xff] }
  0xec   :  { %993 = vmatpush.msrb.mxu3 %v922_v58 }
  0xed   :  { %975 = vmatpush.msrb.mxu2 %v904_v27  ;;  %1026 = vmatpush.msra.mxu0 %v1011_v18  ;;  %v1001_v27 = vld [vmem:[#allocation9] sm:$0xff] }
  0xee   :  { %994 = vmatpush.msrb.mxu3 %v921_v59 }
  0xef   :  { %1027 = vmatpush.msra.mxu0 %v1010_v19 }
  0xf0   :  { %995 = vmatpush.msrb.mxu3 %v920_v8 }
  0xf1   :  { %1028 = vmatpush.msra.mxu0 %v1009_v20 }
  0xf3   :  { %1029 = vmatpush.msra.mxu0 %v1008_v21 }
  0xf5   :  { %1030 = vmatpush.msra.mxu0 %v1007_v35 }
  0xf7   :  { %1031 = vmatpush.msra.mxu0 %v1006_v22 }
  0xf9   :  { %1032 = vmatpush.msra.mxu0 %v1005_v23 }
  0xfb   :  { %1033 = vmatpush.msra.mxu0 %v1004_v24 }
  0xfd   :  { %1034 = vmatpush.msra.mxu0 %v1003_v25 }
  0xff   :  { %v622_v34 = vpop.f32.mrf.mxu3  ;;  %1035 = vmatpush.msra.mxu0 %v1002_v26 }
 0x100   :  { %v623_v38 = vadd.f32 %v622_v34, %v460_v33 }
 0x101   :  { %1036 = vmatpush.msra.mxu0 %v1001_v27 }
 0x106   :  { %v642_v40 = vpop.f32.mrf.mxu0 }
 0x107   :  { %v643_v41 = vadd.f32 %v642_v40, %v623_v38  ;;  %v682_v43 = vpop.f32.mrf.mxu2 }
 0x10d   :  { %v662_v42 = vpop.f32.mrf.mxu1 }
 0x10e   :  { %v663_v47 = vadd.f32 %v662_v42, %v643_v41 }
 0x110   :  { %v683_v45 = vadd.f32 %v682_v43, %v663_v47  ;;  %v702_v46 = vpop.f32.mrf.mxu3 }
 0x112   :  { %v703_v48 = vadd.f32 %v702_v46, %v683_v45 }
 0x118   :  { %v722_v50 = vpop.f32.mrf.mxu0 }
 0x119   :  { %v723_v39 = vadd.f32 %v722_v50, %v703_v48  ;;  %v742_v51 = vpop.f32.mrf.mxu1 }
 0x11b   :  { %v743_v52 = vadd.f32 %v742_v51, %v723_v39 }
 0x11d   :  { %v886_v53 = vmax.f32 %v743_v52, 0.0 }
 0x11f   :  { %976 = vmatmul.f32.vlgmr.msrb.gmra.mxu2 %v886_v53 }
 0x13a   :  { %v762_v61 = vpop.f32.mrf.mxu2 }
 0x13b   :  { %v763_v62 = vadd.f32 %v762_v61, %v461_v60 }
 0x145   :  { %v822_v3 = vpop.f32.mrf.mxu1 }
 0x149   :  { %v782_v63 = vpop.f32.mrf.mxu3 }
 0x14a   :  { %v783_v0 = vadd.f32 %v782_v63, %v763_v62  ;;  %v802_v1 = vpop.f32.mrf.mxu0 }
 0x14c   :  { %v803_v5 = vadd.f32 %v802_v1, %v783_v0 }
 0x14e   :  { %v823_v6 = vadd.f32 %v822_v3, %v803_v5 }
 0x14f   :  { %v842_v7 = vpop.f32.mrf.mxu2 }
 0x150   :  { %v843_v9 = vadd.f32 %v842_v7, %v823_v6 }
 0x153   :  { %v862_v10 = vpop.f32.mrf.mxu3 }
 0x154   :  { %v863_v11 = vadd.f32 %v862_v10, %v843_v9 }
 0x158   :  { %v882_v12 = vpop.f32.mrf.mxu0 }
 0x159   :  { %v883_v13 = vadd.f32 %v882_v12, %v863_v11 }
 0x15b   :  { %v887_v2 = vmax.f32 %v883_v13, 0.0 }
 0x15d   :  { %996 = vmatmul.f32.vlgmr.msrb.gmra.mxu3 %v887_v2 }
 0x163   :  { %v957_v29 = vpop.f32.mrf.mxu1 }
 0x164   :  { %v958_v31 = vadd.f32 %v1060_v28, %v957_v29 }
 0x1a2   :  { %v977_v30 = vpop.f32.mrf.mxu2 }
 0x1a3   :  { %v978_v32 = vadd.f32 %v977_v30, %v958_v31 }
 0x1e0   :  { %v997_v33 = vpop.f32.mrf.mxu3 }
 0x1e1   :  { %v998_v34 = vadd.f32 %v997_v33, %v978_v32 }
 0x1e3   :  { %v1000_v36 = vmax.f32 %v998_v34, 0.0 }
 0x1e5   :  { %1037 = vmatmul.f32.vlgmr.msra.gmra.mxu0 %v1000_v36 }
 0x262   :  { %v1038_v38 = vpop.f32.mrf.mxu0 }
 0x263   :  { %v1039_v40 = vadd.f32 %v1061_v37, %v1038_v38 }
 0x265   :  { %1041 = vst [vmem:[%s1353_s7] sm:$0xff] %v1039_v40 }
 0x266   :  { %1046 = vsyncpa [#allocation3], 1 }
 0x267   :  { %1047 = vsyncpa [#allocation5], 1 }
 0x268   :  { %1048 = vsyncpa [#allocation8], 1 }
 0x269   :  { %1049 = vsyncpa [#allocation11], 1 }

</bundles_post_ra>
